<compile_context>
chip_gen: v5e
topology: v5e:2x2
jax: 0.10.0
libtpu: 0.0.40
codegen_flags: <defaults>
</compile_context>

<pallas_src>
import jax
import jax.numpy as jnp
from jax.experimental import pallas as pl
from jax.experimental.pallas import tpu as pltpu


def _net_kernel(params_ref, x_ref, o_ref):
    # params_ref: (8, 128) f32 slab (zero padded):
    #   [:, 0:10]   -> w1 rows (rows 5..7 are zero)
    #   [:, 10:11]  -> b1 column (rows 5..7 are zero)
    #   [:, 11:12]  -> w2 column (rows 5..7 are zero)
    #   [0:1,12:13] -> b2
    # x_ref: (10, TB) f32, batch on the lane axis.  o_ref: (1, TB) f32.
    x = x_ref[...]                                   # (10, TB)
    w1 = params_ref[:, 0:10]                         # (8, 10)
    b1 = params_ref[:, 10:11]                        # (8, 1)
    w2 = params_ref[:, 11:12]                        # (8, 1)
    b2 = params_ref[0:1, 12:13]                      # (1, 1)

    # Layer 1 on the MXU: (8,10) @ (10,TB) -> (8,TB); bias broadcast + ReLU on VPU.
    h = jnp.dot(w1, x, preferred_element_type=jnp.float32) + b1
    h = jnp.maximum(h, 0.0)

    # Layer 2 (out_features=1): VPU multiply + XLU sublane reduce.  The three
    # zero-padded rows contribute exactly 0.
    y = jnp.sum(h * w2, axis=0, keepdims=True) + b2  # (1, TB)
    o_ref[...] = y.astype(o_ref.dtype)


def pack_params(w1, b1, w2, b2):
    """Pack PyTorch-layout params (w1:(5,10), b1:(5,), w2:(1,5), b2:(1,))
    into a single (8,128)-aligned f32 slab (one DMA, stays resident)."""
    p = jnp.zeros((8, 128), jnp.float32)
    p = p.at[0:5, 0:10].set(w1.astype(jnp.float32))
    p = p.at[0:5, 10].set(b1.astype(jnp.float32))
    p = p.at[0:5, 11].set(w2.reshape(5).astype(jnp.float32))
    p = p.at[0, 12].set(b2.reshape(()).astype(jnp.float32))
    return p


def _round_up(v, m):
    return ((v + m - 1) // m) * m


def _pick_tile(b128, block_b):
    """Pick the batch tile so that (a) tb <= block_b, (b) tb % 128 == 0, and
    (c) padding waste stays below one 128-lane group per grid step."""
    if b128 <= block_b:
        return b128
    n_steps = -(-b128 // block_b)          # ceil
    return _round_up(-(-b128 // n_steps), 128)


def net_forward_batch_last(x_t, w1, b1, w2, b2, *, block_b=65536):
    """Forward pass on batch-last activations.  x_t: (10, B) f32 -> (1, B).

    This is the preferred entry point for a producer that already emits
    lane-dense (feature, batch) activations: no transpose, HBM is read once.
    """
    F, B = x_t.shape
    assert F == 10, "Net expects 10 input features"
    block_b = _round_up(max(block_b, 128), 128)

    params = pack_params(w1, b1, w2, b2)

    b128 = _round_up(B, 128)
    tb = _pick_tile(b128, block_b)
    b_pad = _round_up(b128, tb)
    grid = (b_pad // tb,)

    x_t = x_t.astype(jnp.float32)
    if b_pad != B:
        # Single pad op (no zeros-slab materialization + scatter).
        x_t = jnp.pad(x_t, ((0, 0), (0, b_pad - B)))

    # Advisory cost hint: ~44 B and ~120 flops of intrinsic traffic/compute
    # per batch column, plus the one-shot param slab.
    cost = pl.CostEstimate(
        flops=120 * b_pad,
        transcendentals=0,
        bytes_accessed=44 * b_pad + 8 * 128 * 4,
    )

    out_t = pl.pallas_call(
        _net_kernel,
        out_shape=jax.ShapeDtypeStruct((1, b_pad), jnp.float32),
        grid=grid,
        in_specs=[
            # Param slab: constant index_map -> fetched once, resident in VMEM.
            pl.BlockSpec((8, 128), lambda i: (0, 0)),
            # Pipelined (double-buffered) batch tiles of x, lane-dense.
            pl.BlockSpec((10, tb), lambda i: (0, i)),
        ],
        out_specs=pl.BlockSpec((1, tb), lambda i: (0, i)),
        compiler_params=pltpu.CompilerParams(
            dimension_semantics=("parallel",),
        ),
        cost_estimate=cost,
    )(params, x_t)

    # Padded columns hold relu(b1)@w2 + b2, not zero -- they MUST be sliced off.
    return out_t[:, :B]


def net_forward(x, w1, b1, w2, b2, *, block_b=65536):
    """PyTorch-facing forward pass.  x: (B, 10) f32 -> (B, 1) f32.

    Params use the PyTorch convention: w1 (5,10), b1 (5,), w2 (1,5), b2 (1,).
    The (B,10) -> (10,B) transpose here is the only extra HBM round trip; use
    `net_forward_batch_last` from a batch-last producer to avoid it.
    """
    B, F = x.shape
    assert F == 10, "Net expects 10 input features"
    out_t = net_forward_batch_last(x.T, w1, b1, w2, b2, block_b=block_b)
    return out_t.T


def init_params(key):
    # nn.Linear-style init U(-1/sqrt(fan_in), 1/sqrt(fan_in)), PyTorch layout.
    k1, k2, k3, k4 = jax.random.split(key, 4)
    bound1 = 1.0 / jnp.sqrt(10.0)
    bound2 = 1.0 / jnp.sqrt(5.0)
    w1 = jax.random.uniform(k1, (5, 10), jnp.float32, -bound1, bound1)
    b1 = jax.random.uniform(k2, (5,), jnp.float32, -bound1, bound1)
    w2 = jax.random.uniform(k3, (1, 5), jnp.float32, -bound2, bound2)
    b2 = jax.random.uniform(k4, (1,), jnp.float32, -bound2, bound2)
    return w1, b1, w2, b2


def _reference(x, w1, b1, w2, b2):
    return jnp.maximum(x @ w1.T + b1, 0.0) @ w2.T + b2


if __name__ == "__main__":
    key = jax.random.PRNGKey(0)
    key_x, key_x2, key_p = jax.random.split(key, 3)
    w1, b1, w2, b2 = init_params(key_p)

    # 1) Small demo batch (padded to one 128-lane tile inside the wrapper).
    B = 8
    x = jax.random.normal(key_x, (B, 10), jnp.float32)
    out = jax.block_until_ready(net_forward(x, w1, b1, w2, b2))
    ref = _reference(x, w1, b1, w2, b2)
    assert out.shape == (B, 1)
    assert jnp.allclose(out, ref, atol=1e-5, rtol=1e-5)

    # 2) Non-tile-multiple batch with a small block_b to exercise the
    #    multi-step grid + adaptive-tile / padding path.
    B2 = 300
    x2 = jax.random.normal(key_x2, (B2, 10), jnp.float32)
    out2 = jax.block_until_ready(net_forward(x2, w1, b1, w2, b2, block_b=128))
    ref2 = _reference(x2, w1, b1, w2, b2)
    assert out2.shape == (B2, 1)
    assert jnp.allclose(out2, ref2, atol=1e-5, rtol=1e-5)

    # 3) Batch-last producer path (no host-side transpose).
    out3 = jax.block_until_ready(
        net_forward_batch_last(x2.T, w1, b1, w2, b2, block_b=256))
    assert out3.shape == (1, B2)
    assert jnp.allclose(out3.T, ref2, atol=1e-5, rtol=1e-5)

    print("KERNEL_OK")
</pallas_src>

<mosaic_0001>
module attributes {stable_mosaic.version = 11 : i64} {
  func.func @_net_kernel(%arg0: i32, %arg1: memref<8x128xf32, #tpu.memory_space<vmem>>, %arg2: memref<10x128xf32, #tpu.memory_space<vmem>>, %arg3: memref<1x128xf32, #tpu.memory_space<vmem>>) attributes {dimension_semantics = [#tpu.dimension_semantics<parallel>], iteration_bounds = array<i64: 1>, scalar_prefetch = 0 : i64, scratch_operands = 0 : i64, tpu.core_type = #tpu.core_type<tc>, window_params = [{pipeline_mode = #tpu.pipeline_mode<synchronous>, transform_indices = @transform_0, window_bounds = array<i64: 8, 128>}, {transform_indices = @transform_1, window_bounds = array<i64: 10, 128>}, {transform_indices = @transform_2, window_bounds = array<i64: 1, 128>}]} {
    %c0 = arith.constant 0 : index
    %c0_0 = arith.constant 0 : index
    %0 = vector.load %arg2[%c0, %c0_0] : memref<10x128xf32, #tpu.memory_space<vmem>>, vector<10x128xf32>
    %c0_1 = arith.constant 0 : index
    %c0_2 = arith.constant 0 : index
    %1 = vector.load %arg1[%c0_1, %c0_2] : memref<8x128xf32, #tpu.memory_space<vmem>>, vector<8x10xf32>
    %c0_3 = arith.constant 0 : index
    %c10 = arith.constant 10 : index
    %2 = vector.load %arg1[%c0_3, %c10] : memref<8x128xf32, #tpu.memory_space<vmem>>, vector<8x1xf32>
    %c0_4 = arith.constant 0 : index
    %c11 = arith.constant 11 : index
    %3 = vector.load %arg1[%c0_4, %c11] : memref<8x128xf32, #tpu.memory_space<vmem>>, vector<8x1xf32>
    %c0_5 = arith.constant 0 : index
    %c12 = arith.constant 12 : index
    %4 = vector.load %arg1[%c0_5, %c12] : memref<8x128xf32, #tpu.memory_space<vmem>>, vector<1x1xf32>
    %cst = arith.constant dense<0.000000e+00> : vector<8x128xf32>
    %5 = tpu.matmul %1, %0, %cst {dimension_numbers = #tpu.dot_dimension_numbers<[1], [0], [0], [1], [0, 0, 1, 1], [], []>} : vector<8x10xf32>, vector<10x128xf32>, vector<8x128xf32> -> vector<8x128xf32>
    %6 = vector.broadcast %2 : vector<8x1xf32> to vector<8x128xf32>
    %7 = arith.addf %5, %6 : vector<8x128xf32>
    %cst_6 = arith.constant 0.000000e+00 : f32
    %8 = vector.broadcast %cst_6 : f32 to vector<8x128xf32>
    %9 = arith.maximumf %7, %8 : vector<8x128xf32>
    %10 = vector.broadcast %3 : vector<8x1xf32> to vector<8x128xf32>
    %11 = arith.mulf %9, %10 : vector<8x128xf32>
    %cst_7 = arith.constant dense<0.000000e+00> : vector<128xf32>
    %12 = vector.multi_reduction <add>, %11, %cst_7 [0] : vector<8x128xf32> to vector<128xf32>
    %13 = vector.shape_cast %12 : vector<128xf32> to vector<1x128xf32>
    %14 = vector.broadcast %4 : vector<1x1xf32> to vector<1x128xf32>
    %15 = arith.addf %13, %14 : vector<1x128xf32>
    %c0_8 = arith.constant 0 : index
    %c0_9 = arith.constant 0 : index
    %16 = vector.load %arg3[%c0_8, %c0_9] : memref<1x128xf32, #tpu.memory_space<vmem>>, vector<1x128xf32>
    tpu.vector_store %arg3[%c0_8, %c0_9], %15 {strides = array<i32>} : memref<1x128xf32, #tpu.memory_space<vmem>>, vector<1x128xf32>,
    return
  }
  func.func @transform_0(%arg0: i32) -> (i32, i32) {
    %c0_i32 = arith.constant 0 : i32
    %c0_i32_0 = arith.constant 0 : i32
    %c0_i32_1 = arith.constant 0 : i32
    return %c0_i32, %c0_i32_0 : i32, i32
  }
  func.func @transform_1(%arg0: i32) -> (i32, i32) {
    %c0_i32 = arith.constant 0 : i32
    %c0_i32_0 = arith.constant 0 : i32
    return %c0_i32, %arg0 : i32, i32
  }
  func.func @transform_2(%arg0: i32) -> (i32, i32) {
    %c0_i32 = arith.constant 0 : i32
    %c0_i32_0 = arith.constant 0 : i32
    return %c0_i32, %arg0 : i32, i32
  }
}

</mosaic_0001>

<bundles_post_ra>
// kernel: tpu_custom_call.1
= control target key start
LH: loop header
LB: loop body
LE: loop exit
PB: predicated region body
PF: predicated region fallthrough
CT: control target
= control target key end

     0   :  { %7 = vsyncpa [#allocation3], 0  ;;  %s239_s0 = inlined_call_operand.hbm [shape: f32[8,128], index: 0, kind: input, shape index: {}]   ;;  %s240_s1 = inlined_call_operand.hbm [shape: f32[10,128], index: 1, kind: input, shape index: {}]   ;;  %s241_s2 = inlined_call_operand.hbm [shape: f32[1,128], index: 2, kind: output, shape index: {}]  }
   0x1   :  { %8 = vsyncpa [#allocation6], 0 }
   0x2   :  { %9 = vsyncpa [#allocation4], 0  ;;  %s15_s11 = sshll.u32 %s239_s0, 4  ;;  %s207_s12 = smov [#allocation2]   ;;  %s16_s11 = int_to_ptr.hbm [resolvable:$true] %s15_s11 }
   0x3   :  { %s17_s13 = sshll.u32 %s207_s12, 4  ;;  %s25_s16 = sshll.u32 %s240_s1, 4  ;;  %s18_s13 = int_to_ptr.vmem [resolvable:$true] %s17_s13  ;;  %s26_s16 = int_to_ptr.hbm [resolvable:$true] %s25_s16 }
   0x4   :  { %20 = dma.hbm_to_vmem [thread:$0]  %s16_s11, 128, %s18_s13, [#allocation3]  }
   0x5   :  { %s208_s17 = smov [#allocation5]   ;;  %s209_s19 = smov 128  }
   0x6   :  { %s27_s18 = sshll.u32 %s208_s17, 4  ;;  %s210_s20 = smov 8   ;;  %s28_s18 = int_to_ptr.vmem [resolvable:$true] %s27_s18 }
   0x7   :  { %33 = dma.hbm_to_vmem [thread:$0]  %s26_s16, 256, %s28_s18, [#allocation6], %s209_s19, %s209_s19, %s210_s20  }
   0x8   :  { %201 = dma.done.wait [#allocation3], 128  }
   0x9   :  { %202 = vsyncadd [#allocation3], 4294967168 }
   0xa   :  { %203 = dma.done.wait [#allocation6], 256  }
   0xb   :  { %204 = vsyncadd [#allocation6], 4294967040  ;;  %v211_v0 = vmov 10   ;;  %v212_v1 = vmov 12   ;;  %vm54_vm0 = vcmask 1041408   ;;  %v42_v3 = vld [vmem:[#allocation5] sm:$0xff] }
   0xc   :  { %125 = vset.pattern.permute.xlu0 %v211_v0  ;;  %127 = vset.pattern.permute.xlu1 %v212_v1  ;;  %v43_v2 = vld [vmem:[#allocation5 + $0x8] sm:$0x3]  ;;  %v44_v4 = vld [vmem:[#allocation2] sm:$0xff]  ;;  %vm51_vm1 = vcmask 80896   ;;  %v213_v6 = vmov 11   ;;  %s214_s0 = smov [#allocation7]  }
   0xd   :  { %115 = vmatpush.msk.msra.mxu0 %vm54_vm0, %v43_v2  ;;  %48 = vperm.xlu0 %125, %v44_v4   ;;  %v45_v5 = vld [vmem:[#allocation2] sm:$0x1]  ;;  %s102_s1 = sshll.u32 %s214_s0, 4  ;;  %s104_s23 = sshll.u32 %s241_s2, 4  ;;  %s103_s1 = int_to_ptr.vmem [resolvable:$true] %s102_s1  ;;  %s105_s23 = int_to_ptr.hbm [resolvable:$true] %s104_s23 }
   0xe   :  { %92 = vperm.xlu1 %127, %v45_v5  }
   0xf   :  { %73 = vmatpush.msra.mxu0 %v42_v3 }
  0x10   :  { %116 = vmatmul.msk.f32.vlgmr.msra.gmra.mxu0 %vm51_vm1, %v44_v4 }
  0x15   :  { %126 = vset.pattern.permute.xlu0 %v213_v6 }
  0x16   :  { %80 = vperm.xlu0 %126, %v44_v4  }
  0x1e   :  { %128 = vset.pattern.permute.xlu0 %v212_v1 }
  0x7f   :  { %v49_v7 = vpop.permute.xlu0 %48 }
  0x80   :  { %v93_v18 = vpop.permute.xlu1 %92 }
  0x88   :  { %v81_v10 = vpop.permute.xlu0 %80 }
  0x8d   :  { %v75_v8 = vpop.f32.mrf.mxu0 }
  0x8e   :  { %v76_v9 = vadd.f32 %v75_v8, %v49_v7 }
  0x90   :  { %v78_v11 = vmax.f32 %v76_v9, 0.0 }
  0x92   :  { %v83_v12 = vmul.f32 %v81_v10, %v78_v11 }
  0x94   :  { %v84_v13 = vrot.slane %v83_v12, 4 }
  0x96   :  { %v85_v14 = vadd.f32 %v84_v13, %v83_v12 }
  0x98   :  { %v86_v15 = vrot.slane %v85_v14, 2 }
  0x9a   :  { %v87_v16 = vadd.f32 %v86_v15, %v85_v14 }
  0x9c   :  { %v88_v17 = vrot.slane %v87_v16, 1 }
  0x9e   :  { %v89_v19 = vadd.f32 %v88_v17, %v87_v16 }
  0xa0   :  { %v95_v20 = vadd.f32 %v93_v18, %v89_v19 }
  0xa2   :  { %96 = vst [vmem:[#allocation7] sm:$0x1] %v95_v20 }
  0xa3   :  { %107 = dma.vmem_to_hbm [thread:$0]  %s103_s1, 16, %s105_s23, [#allocation4]  }
  0xa4   :  { %205 = dma.done.wait [#allocation4], 16  }
  0xa5   :  { %206 = vsyncadd [#allocation4], 4294967280 }
  0xa6   :  { %112 = vsyncpa [#allocation3], 1 }
  0xa7   :  { %113 = vsyncpa [#allocation6], 1 }
  0xa8   :  { %114 = vsyncpa [#allocation4], 1 }

</bundles_post_ra>
